<compile_context>
chip_gen: v6e
topology: v6e:2x2x1
jax: 0.10.0
libtpu: 0.0.40
codegen_flags: <defaults>
</compile_context>

<pallas_src>
import functools

import numpy as np
import jax
import jax.numpy as jnp
from jax import lax
from jax.experimental import pallas as pl
from jax.experimental.pallas import tpu as pltpu


# lane slots of the per-tile partial-sum block written by the kernel
_S_PHOTO_FW, _S_PHOTO_BW, _S_CONSIST = 0, 1, 2


# --------------------------------------------------------------------------
# Pallas kernel: per (batch, pixel-tile) partial photometric / consistency sums
# --------------------------------------------------------------------------
def _scale_loss_kernel(*refs, has_bw):
    """Separable bilinear warp + photometric / consistency partial sums.

    grid_sample(align_corners=True, padding='zeros') at pixel coords
    (x + u, y + v) is computed as a separable scatter with tent weights:
        warped[c, p] = sum_y wyT[y, p] * sum_x src[c, y, x] * wxT[x, p]
    i.e. one MXU matmul over x followed by a broadcast-multiply + sublane
    reduce over y.  Out-of-range coords produce all-zero tent weights, which
    reproduces zero padding exactly (also used to neutralize padded pixels).
    """
    if has_bw:
        (coords_ref, img2s_ref, img1s_ref, fbws_ref,
         img1t_ref, ffwt_ref, img2t_ref, fbwt_ref, out_ref) = refs
    else:
        (coords_ref, img2s_ref, img1t_ref, ffwt_ref, out_ref) = refs
        img1s_ref = fbws_ref = img2t_ref = fbwt_ref = None

    CI = img1t_ref.shape[1]            # image channels
    W = img2s_ref.shape[2]             # image width  (warp source is (C*H, W))
    H = img2s_ref.shape[1] // CI       # image height
    TP = coords_ref.shape[1]           # pixels handled by this grid step

    coords = coords_ref[...]           # (2, TP): row0 = x, row1 = y; padded lanes = -10
    gx = coords[0:1, :]
    gy = coords[1:2, :]

    # hoisted iotas, shared by the forward and backward scatters
    xi = lax.broadcasted_iota(jnp.int32, (W, TP), 0).astype(jnp.float32)
    yi = lax.broadcasted_iota(jnp.int32, (H, TP), 0).astype(jnp.float32)

    def build_scatter(flow_t):
        # tent weights: no floor, no int casts, no compares/selects
        ix = gx + flow_t[0:1, :]
        iy = gy + flow_t[1:2, :]
        wxT = jnp.maximum(0.0, 1.0 - jnp.abs(xi - ix))    # (W, TP)
        wyT = jnp.maximum(0.0, 1.0 - jnp.abs(yi - iy))    # (H, TP)
        return wxT, wyT

    def warp(src2d, n_ch, wxT, wyT):
        # src2d: (n_ch*H, W); returns (n_ch, TP) f32.
        # TODO(synk): for v6e/v7x one could zero-pad K=W (and pick TP) up to a
        # multiple of 256 to fill the 256-wide MXU; skipped for simplicity.
        t = jnp.dot(src2d, wxT.astype(src2d.dtype),
                    preferred_element_type=jnp.float32)   # (n_ch*H, TP)
        t = t.reshape(n_ch, H, TP)                        # free when H % 8 == 0
        return jnp.sum(t * wyT[None, :, :], axis=1)       # single y-reduce

    # ---- photometric fw: sum |img1 - warp(img2, flow_fw)| over this tile ----
    ffw_t = ffwt_ref[0]                                   # (2, TP)
    wxT_f, wyT_f = build_scatter(ffw_t)                   # forward scatter, reused below
    w_img2 = warp(img2s_ref[0], CI, wxT_f, wyT_f)         # bf16 MXU, f32 accumulation
    photo_fw = jnp.sum(jnp.abs(img1t_ref[0] - w_img2))    # one scalar reduce
    results = [(_S_PHOTO_FW, photo_fw)]

    if has_bw:
        # consistency: reuse the forward scatter to warp flow_bw (kept in f32;
        # the hard occlusion threshold can flip under bf16 warp error).
        w_fbw = warp(fbws_ref[0], 2, wxT_f, wyT_f)        # (2, TP) f32
        diff = ffw_t + w_fbw
        flow_mag = jnp.sqrt(jnp.sum(ffw_t * ffw_t, axis=0, keepdims=True) + 1e-8)
        # TODO(synk): diff_mag has no epsilon (matches the reference forward);
        # add one if this loss is ever differentiated through.
        diff_mag = jnp.sqrt(jnp.sum(diff * diff, axis=0, keepdims=True))
        not_occ = (diff_mag <= 0.01 * flow_mag + 0.5).astype(jnp.float32)
        consist = jnp.sum(not_occ * jnp.sum(jnp.abs(diff), axis=0, keepdims=True))

        # photometric bw: sum |img2 - warp(img1, flow_bw)|
        wxT_b, wyT_b = build_scatter(fbwt_ref[0])
        w_img1 = warp(img1s_ref[0], CI, wxT_b, wyT_b)
        photo_bw = jnp.sum(jnp.abs(img2t_ref[0] - w_img1))
        results += [(_S_PHOTO_BW, photo_bw), (_S_CONSIST, consist)]

    # pack the partial sums into distinct lanes of one (8, 128) output block
    lane = lax.broadcasted_iota(jnp.int32, (8, 128), 1)
    acc = jnp.zeros((8, 128), jnp.float32)
    for slot, val in results:
        acc = acc + jnp.where(lane == slot, val, 0.0)
    out_ref[...] = acc[None, None]


# --------------------------------------------------------------------------
# Plain-JAX helpers shared by the wrapper, the fallback path and the reference
# --------------------------------------------------------------------------
def _edge_aware_loss_jax(flow, image):
    # compute_edge_aware_loss: mean(exp(-|∇gray|) * |∇flow|) in x and y
    gray = jnp.mean(image, axis=1, keepdims=True)
    img_dx = gray[:, :, :, 1:] - gray[:, :, :, :-1]
    img_dy = gray[:, :, 1:, :] - gray[:, :, :-1, :]
    flow_dx = flow[:, :, :, 1:] - flow[:, :, :, :-1]
    flow_dy = flow[:, :, 1:, :] - flow[:, :, :-1, :]
    return (jnp.mean(jnp.exp(-jnp.abs(img_dx)) * jnp.abs(flow_dx)) +
            jnp.mean(jnp.exp(-jnp.abs(img_dy)) * jnp.abs(flow_dy)))


def _warp_image_jax(img, flow):
    """Bilinear warp at pixel coords (x+u, y+v) with zero padding.

    The PyTorch module normalizes vgrid with 2*x/(W-1)-1 and then calls
    grid_sample(align_corners=True), which maps straight back to pixel
    coordinates, so raw pixel-coord bilinear sampling with zero padding is
    exactly equivalent."""
    B, C, H, W = img.shape
    gx = jnp.arange(W, dtype=jnp.float32)[None, :] * jnp.ones((H, 1), jnp.float32)
    gy = jnp.arange(H, dtype=jnp.float32)[:, None] * jnp.ones((1, W), jnp.float32)
    ix = gx[None] + flow[:, 0]
    iy = gy[None] + flow[:, 1]
    x0 = jnp.floor(ix)
    y0 = jnp.floor(iy)
    imgf = img.reshape(B, C, H * W)

    def corner(xc, yc, w):
        xint = xc.astype(jnp.int32)
        yint = yc.astype(jnp.int32)
        valid = (xint >= 0) & (xint < W) & (yint >= 0) & (yint < H)
        idx = jnp.clip(yint, 0, H - 1) * W + jnp.clip(xint, 0, W - 1)
        idx = idx.reshape(B, 1, H * W)
        vals = jnp.take_along_axis(imgf, jnp.broadcast_to(idx, (B, C, H * W)), axis=2)
        wv = jnp.where(valid, w, 0.0).reshape(B, 1, H * W)
        return vals * wv

    wx1 = ix - x0
    wx0 = 1.0 - wx1
    wy1 = iy - y0
    wy0 = 1.0 - wy1
    out = (corner(x0, y0, wx0 * wy0) + corner(x0 + 1, y0, wx1 * wy0) +
           corner(x0, y0 + 1, wx0 * wy1) + corner(x0 + 1, y0 + 1, wx1 * wy1))
    return out.reshape(B, C, H, W)


def _scale_losses_jax(img1_s, img2_s, flow_fw, flow_bw):
    """Pure-JAX per-scale path (used for coarse pyramid levels)."""
    photo = jnp.mean(jnp.abs(img1_s - _warp_image_jax(img2_s, flow_fw)))
    smooth = _edge_aware_loss_jax(flow_fw, img1_s)
    consist = jnp.float32(0.0)
    if flow_bw is not None:
        photo = photo + jnp.mean(jnp.abs(img2_s - _warp_image_jax(img1_s, flow_bw)))
        smooth = smooth + _edge_aware_loss_jax(flow_bw, img2_s)
        warped_bw = _warp_image_jax(flow_bw, flow_fw)
        diff = flow_fw + warped_bw
        mag = jnp.sqrt(jnp.sum(flow_fw ** 2, axis=1, keepdims=True) + 1e-8)
        occ = jnp.sqrt(jnp.sum(diff ** 2, axis=1, keepdims=True)) > 0.01 * mag + 0.5
        mask = (~occ).astype(jnp.float32)
        consist = jnp.mean(mask * jnp.abs(diff))
    return photo, smooth, consist


# --------------------------------------------------------------------------
# Pallas wrapper: one pallas_call per scale, gridded over (batch, pixel tiles)
# --------------------------------------------------------------------------
def _round_up(x, m):
    return ((x + m - 1) // m) * m


def _scale_losses_pallas(img1_s, img2_s, flow_fw, flow_bw, *, tile_pixels):
    B, CI, H, W = img1_s.shape
    HW = H * W
    has_bw = flow_bw is not None

    # lane-dense pixel tiling: TP is a multiple of 128
    TP = max(128, (int(tile_pixels) // 128) * 128)
    TP = min(TP, _round_up(HW, 128))
    NT = pl.cdiv(HW, TP)
    HWp = NT * TP
    pad = HWp - HW

    f32 = jnp.float32
    img1_s = img1_s.astype(f32)
    img2_s = img2_s.astype(f32)
    flow_fw = flow_fw.astype(f32)
    if has_bw:
        flow_bw = flow_bw.astype(f32)

    # full-image warp sources, resident per batch: (B, C*H, W).  Images are
    # pre-cast to bf16 ONCE here (they are MXU operands only); flow_bw stays
    # f32 for the occlusion-threshold precision.
    img2_src = img2_s.astype(jnp.bfloat16).reshape(B, CI * H, W)

    # flat + padded per-pixel targets: (B, C, HWp); padded pixels are zero.
    def flat_pad(x):
        C = x.shape[1]
        xf = x.reshape(B, C, HW)
        if pad:
            xf = jnp.pad(xf, ((0, 0), (0, 0), (0, pad)))
        return xf

    img1_t = flat_pad(img1_s)
    ffw_t = flat_pad(flow_fw)

    # static target coords (x; y) per padded pixel; padded lanes pushed out of
    # range so their tent weights (hence all their contributions) are zero.
    xs = (np.arange(HWp) % W).astype(np.float32)
    ys = (np.arange(HWp) // W).astype(np.float32)
    xs[HW:] = -10.0
    ys[HW:] = -10.0
    coords = jnp.asarray(np.stack([xs, ys]))               # (2, HWp)

    spec_coords = pl.BlockSpec((2, TP), lambda b, r: (0, r))
    spec_src_img = pl.BlockSpec((1, CI * H, W), lambda b, r: (b, 0, 0))
    spec_src_flow = pl.BlockSpec((1, 2 * H, W), lambda b, r: (b, 0, 0))
    spec_t_img = pl.BlockSpec((1, CI, TP), lambda b, r: (b, 0, r))
    spec_t_flow = pl.BlockSpec((1, 2, TP), lambda b, r: (b, 0, r))

    inputs = [coords, img2_src]
    in_specs = [spec_coords, spec_src_img]
    if has_bw:
        inputs += [img1_s.astype(jnp.bfloat16).reshape(B, CI * H, W),
                   flow_bw.reshape(B, 2 * H, W)]
        in_specs += [spec_src_img, spec_src_flow]
    inputs += [img1_t, ffw_t]
    in_specs += [spec_t_img, spec_t_flow]
    if has_bw:
        inputs += [flat_pad(img2_s), flat_pad(flow_bw)]
        in_specs += [spec_t_img, spec_t_flow]

    # VMEM budget: the resident full-image warp-source blocks dominate (x2 for
    # double buffering), plus per-tile blocks and in-kernel temporaries.
    hb = int(has_bw)
    src_bytes = CI * H * W * 2 + hb * (CI * H * W * 2 + 2 * H * W * 4)
    tile_bytes = (2 + CI + 2 + hb * (CI + 2)) * TP * 4 + 8 * 128 * 4
    scratch_bytes = (W + H + 2 * (CI + 2) * H + 8) * TP * 4
    vmem_limit = int(min(max(2 * (src_bytes + tile_bytes) + scratch_bytes
                             + (4 << 20), 32 << 20), 48 << 20))

    out = pl.pallas_call(
        functools.partial(_scale_loss_kernel, has_bw=has_bw),
        out_shape=jax.ShapeDtypeStruct((B, NT, 8, 128), f32),
        grid=(B, NT),
        in_specs=in_specs,
        out_specs=pl.BlockSpec((1, 1, 8, 128), lambda b, r: (b, r, 0, 0)),
        compiler_params=pltpu.CompilerParams(
            # every (b, r) writes its own output block and no state is carried
            # across steps, so both axes are parallel-safe (fills both
            # TensorCores on v7x even with B == 1; no-op on v5e/v6e).
            dimension_semantics=("parallel", "parallel"),
            vmem_limit_bytes=vmem_limit),
    )(*inputs)

    # single reduction / normalization of the per-tile partial sums
    s = jnp.sum(out[:, :, 0, :], axis=(0, 1))
    n_photo = B * CI * HW
    photo = s[_S_PHOTO_FW] / n_photo
    consist = jnp.float32(0.0)
    if has_bw:
        photo = photo + s[_S_PHOTO_BW] / n_photo
        consist = s[_S_CONSIST] / (B * 2 * HW)

    # edge-aware smoothness: small fused elementwise/reduce work in plain JAX
    # (removes the r==0 full-image bubble and the flow_fw full-image DMA).
    smooth = _edge_aware_loss_jax(flow_fw, img1_s)
    if has_bw:
        smooth = smooth + _edge_aware_loss_jax(flow_bw, img2_s)
    return photo, smooth, consist


# --------------------------------------------------------------------------
# Plain-JAX glue: bilinear resize matching F.interpolate(align_corners=False)
# --------------------------------------------------------------------------
@functools.lru_cache(maxsize=None)
def _bilinear_resize_matrix(out_size, in_size):
    scale = in_size / out_size
    dst = np.arange(out_size, dtype=np.float64)
    src = np.maximum((dst + 0.5) * scale - 0.5, 0.0)
    i0 = np.minimum(np.floor(src).astype(np.int64), in_size - 1)
    i1 = np.minimum(i0 + 1, in_size - 1)
    w1 = src - i0
    w0 = 1.0 - w1
    M = np.zeros((out_size, in_size), dtype=np.float32)
    M[np.arange(out_size), i0] += w0
    M[np.arange(out_size), i1] += w1
    return M


def _resize_bilinear_nchw(img, out_hw):
    # TODO(synk): F.interpolate is implemented as static separable matmuls in
    # plain-JAX glue (weights are compile-time constants); the data-dependent
    # hot path (warping + reductions) lives in the Pallas kernel.
    H_out, W_out = out_hw
    B, C, H, W = img.shape
    if (H, W) == (H_out, W_out):
        return img
    Mh = jnp.asarray(_bilinear_resize_matrix(H_out, H))
    Mw = jnp.asarray(_bilinear_resize_matrix(W_out, W))
    return jnp.einsum('ih,bchw,jw->bcij', Mh, img, Mw)


# --------------------------------------------------------------------------
# UnsupervisedLoss equivalent
# --------------------------------------------------------------------------
class UnsupervisedLossPallas:
    def __init__(self, alpha_photo=1.0, alpha_smooth=0.1, alpha_consist=0.1,
                 scale_weights=None, tile_pixels=4096, min_pallas_pixels=1024):
        # tile_pixels: pixels per kernel grid step (rounded to a multiple of
        #   128 lanes).  VMEM is dominated by the resident full-image
        #   warp-source blocks, from which vmem_limit_bytes is derived.
        # min_pallas_pixels: coarse pyramid levels below this pixel count run
        #   in plain JAX (per-call / per-grid-step overhead dominates there).
        self.alpha_photo = alpha_photo
        self.alpha_smooth = alpha_smooth
        self.alpha_consist = alpha_consist
        self.scale_weights = [0.32, 0.08, 0.02] if scale_weights is None else scale_weights
        self.tile_pixels = tile_pixels
        self.min_pallas_pixels = min_pallas_pixels
        self._forward_jit = jax.jit(self._forward)

    def _forward(self, img1, img2, flow_preds_fw, flow_preds_bw):
        num_scales = len(flow_preds_fw)
        weights = (self.scale_weights if len(self.scale_weights) == num_scales
                   else [1.0 / num_scales] * num_scales)
        total_photo = jnp.float32(0.0)
        total_smooth = jnp.float32(0.0)
        total_consist = jnp.float32(0.0)
        for i, (flow_fw, w) in enumerate(zip(flow_preds_fw, weights)):
            flow_bw = None
            if flow_preds_bw is not None and i < len(flow_preds_bw):
                flow_bw = flow_preds_bw[i]
            if flow_fw.shape[-2:] != img1.shape[-2:]:
                img1_s = _resize_bilinear_nchw(img1, flow_fw.shape[-2:])
                img2_s = _resize_bilinear_nchw(img2, flow_fw.shape[-2:])
            else:
                img1_s, img2_s = img1, img2
            H, W = flow_fw.shape[-2:]
            # Pallas path requires H % 8 == 0 (free channel/row reshape) and
            # enough pixels to amortize kernel-launch / grid-step overhead.
            if H % 8 == 0 and H * W >= self.min_pallas_pixels:
                photo, smooth, consist = _scale_losses_pallas(
                    img1_s, img2_s, flow_fw, flow_bw, tile_pixels=self.tile_pixels)
            else:
                photo, smooth, consist = _scale_losses_jax(
                    img1_s, img2_s, flow_fw, flow_bw)
            total_photo = total_photo + w * photo
            total_smooth = total_smooth + w * smooth
            total_consist = total_consist + w * consist
        total = (self.alpha_photo * total_photo +
                 self.alpha_smooth * total_smooth +
                 self.alpha_consist * total_consist)
        return total, total_photo, total_smooth, total_consist

    def __call__(self, img1, img2, flow_preds_fw, flow_preds_bw=None):
        fw = tuple(flow_preds_fw)
        bw = tuple(flow_preds_bw) if flow_preds_bw is not None else None
        total, photo, smooth, consist = self._forward_jit(img1, img2, fw, bw)
        # values stay on device (no .item()-style host syncs in the hot path)
        loss_dict = {'total': total, 'photometric': photo,
                     'smoothness': smooth, 'consistency': consist}
        return total, loss_dict


# --------------------------------------------------------------------------
# Pure-JAX reference (mirrors the PyTorch module) for validation
# --------------------------------------------------------------------------
def _ref_unsupervised_loss(img1, img2, flow_preds_fw, flow_preds_bw,
                           alpha_photo=1.0, alpha_smooth=0.1, alpha_consist=0.1,
                           scale_weights=(0.32, 0.08, 0.02)):
    num_scales = len(flow_preds_fw)
    weights = (list(scale_weights) if len(scale_weights) == num_scales
               else [1.0 / num_scales] * num_scales)
    tp = ts = tc = jnp.float32(0.0)
    for i, (ffw, w) in enumerate(zip(flow_preds_fw, weights)):
        fbw = None
        if flow_preds_bw is not None and i < len(flow_preds_bw):
            fbw = flow_preds_bw[i]
        if ffw.shape[-2:] != img1.shape[-2:]:
            i1 = _resize_bilinear_nchw(img1, ffw.shape[-2:])
            i2 = _resize_bilinear_nchw(img2, ffw.shape[-2:])
        else:
            i1, i2 = img1, img2
        photo = jnp.mean(jnp.abs(i1 - _warp_image_jax(i2, ffw)))
        if fbw is not None:
            photo = photo + jnp.mean(jnp.abs(i2 - _warp_image_jax(i1, fbw)))
        smooth = _edge_aware_loss_jax(ffw, i1)
        if fbw is not None:
            smooth = smooth + _edge_aware_loss_jax(fbw, i2)
        tp = tp + w * photo
        ts = ts + w * smooth
        if fbw is not None:
            warped_bw = _warp_image_jax(fbw, ffw)
            diff = ffw + warped_bw
            mag = jnp.sqrt(jnp.sum(ffw ** 2, axis=1, keepdims=True) + 1e-8)
            occ = jnp.sqrt(jnp.sum(diff ** 2, axis=1, keepdims=True)) > 0.01 * mag + 0.5
            mask = (~occ).astype(jnp.float32)
            tc = tc + w * jnp.mean(mask * jnp.abs(diff))
    total = alpha_photo * tp + alpha_smooth * ts + alpha_consist * tc
    return total, tp, ts, tc


# --------------------------------------------------------------------------
# Demo
# --------------------------------------------------------------------------
if __name__ == "__main__":
    key = jax.random.PRNGKey(0)
    k = jax.random.split(key, 8)

    B, C, H, W = 2, 3, 16, 20
    img1 = jax.random.uniform(k[0], (B, C, H, W), dtype=jnp.float32)
    img2 = jax.random.uniform(k[1], (B, C, H, W), dtype=jnp.float32)

    flow_preds_fw = [
        jax.random.normal(k[2], (B, 2, 16, 20), dtype=jnp.float32) * 1.5,
        jax.random.normal(k[3], (B, 2, 8, 10), dtype=jnp.float32) * 1.0,
        jax.random.normal(k[4], (B, 2, 4, 5), dtype=jnp.float32) * 0.5,
    ]
    flow_preds_bw = [
        jax.random.normal(k[5], (B, 2, 16, 20), dtype=jnp.float32) * 1.5,
        jax.random.normal(k[6], (B, 2, 8, 10), dtype=jnp.float32) * 1.0,
        jax.random.normal(k[7], (B, 2, 4, 5), dtype=jnp.float32) * 0.5,
    ]

    # tile_pixels=128 -> the 16x20 scale (320 px) runs as 3 lane-dense tiles of
    # 128 padded pixels (exercises tiling + the neutral-padding path);
    # min_pallas_pixels=256 keeps the tiny 8x10 / 4x5 scales on plain JAX.
    loss_fn = UnsupervisedLossPallas(tile_pixels=128, min_pallas_pixels=256)

    total, loss_dict = loss_fn(img1, img2, flow_preds_fw, flow_preds_bw)
    total = jax.block_until_ready(total)

    # also exercise the statically-specialized no-backward-flow path
    total_nb, _ = loss_fn(img1, img2, flow_preds_fw, None)
    total_nb = jax.block_until_ready(total_nb)

    # validate against a pure-JAX mirror of the PyTorch module
    ref_tot, ref_p, ref_s, ref_c = _ref_unsupervised_loss(
        img1, img2, flow_preds_fw, flow_preds_bw)
    ref_tot_nb, _, _, _ = _ref_unsupervised_loss(img1, img2, flow_preds_fw, None)

    np.testing.assert_allclose(np.asarray(total), np.asarray(ref_tot),
                               rtol=2e-2, atol=1e-3)
    np.testing.assert_allclose(np.asarray(loss_dict['photometric']),
                               np.asarray(ref_p), rtol=2e-2, atol=1e-3)
    np.testing.assert_allclose(np.asarray(loss_dict['smoothness']),
                               np.asarray(ref_s), rtol=2e-2, atol=1e-3)
    np.testing.assert_allclose(np.asarray(loss_dict['consistency']),
                               np.asarray(ref_c), rtol=2.5e-1, atol=2e-3)
    np.testing.assert_allclose(np.asarray(total_nb), np.asarray(ref_tot_nb),
                               rtol=2e-2, atol=1e-3)

    print("KERNEL_OK")
</pallas_src>

<mosaic_0001>
module attributes {stable_mosaic.version = 11 : i64} {
  func.func @_scale_loss_kernel(%arg0: i32, %arg1: i32, %arg2: memref<2x128xf32, #tpu.memory_space<vmem>>, %arg3: memref<1x48x20xbf16, #tpu.memory_space<vmem>>, %arg4: memref<1x48x20xbf16, #tpu.memory_space<vmem>>, %arg5: memref<1x32x20xf32, #tpu.memory_space<vmem>>, %arg6: memref<1x3x128xf32, #tpu.memory_space<vmem>>, %arg7: memref<1x2x128xf32, #tpu.memory_space<vmem>>, %arg8: memref<1x3x128xf32, #tpu.memory_space<vmem>>, %arg9: memref<1x2x128xf32, #tpu.memory_space<vmem>>, %arg10: memref<1x1x8x128xf32, #tpu.memory_space<vmem>>) attributes {dimension_semantics = [#tpu.dimension_semantics<parallel>, #tpu.dimension_semantics<parallel>], iteration_bounds = array<i64: 2, 3>, scalar_prefetch = 0 : i64, scratch_operands = 0 : i64, tpu.core_type = #tpu.core_type<tc>, window_params = [{transform_indices = @transform_0, window_bounds = array<i64: 2, 128>}, {transform_indices = @transform_1, window_bounds = array<i64: 1, 48, 20>}, {transform_indices = @transform_2, window_bounds = array<i64: 1, 48, 20>}, {transform_indices = @transform_3, window_bounds = array<i64: 1, 32, 20>}, {transform_indices = @transform_4, window_bounds = array<i64: 1, 3, 128>}, {transform_indices = @transform_5, window_bounds = array<i64: 1, 2, 128>}, {transform_indices = @transform_6, window_bounds = array<i64: 1, 3, 128>}, {transform_indices = @transform_7, window_bounds = array<i64: 1, 2, 128>}, {transform_indices = @transform_8, window_bounds = array<i64: 1, 1, 8, 128>}]} {
    %c0 = arith.constant 0 : index
    %c0_0 = arith.constant 0 : index
    %0 = vector.load %arg2[%c0, %c0_0] : memref<2x128xf32, #tpu.memory_space<vmem>>, vector<2x128xf32>
    %1 = vector.extract_strided_slice %0 {offsets = [0, 0], sizes = [1, 128], strides = [1, 1]} : vector<2x128xf32> to vector<1x128xf32>
    %2 = vector.extract_strided_slice %0 {offsets = [1, 0], sizes = [1, 128], strides = [1, 1]} : vector<2x128xf32> to vector<1x128xf32>
    %3 = tpu.iota {dimensions = array<i32: 0>} : vector<20x128xi32>
    %4 = arith.sitofp %3 : vector<20x128xi32> to vector<20x128xf32>
    %5 = tpu.iota {dimensions = array<i32: 0>} : vector<16x128xi32>
    %6 = arith.sitofp %5 : vector<16x128xi32> to vector<16x128xf32>
    %c0_1 = arith.constant 0 : index
    %c0_2 = arith.constant 0 : index
    %c0_3 = arith.constant 0 : index
    %7 = vector.load %arg7[%c0_1, %c0_2, %c0_3] : memref<1x2x128xf32, #tpu.memory_space<vmem>>, vector<1x2x128xf32>
    %8 = vector.shape_cast %7 : vector<1x2x128xf32> to vector<2x128xf32>
    %9 = vector.extract_strided_slice %8 {offsets = [0, 0], sizes = [1, 128], strides = [1, 1]} : vector<2x128xf32> to vector<1x128xf32>
    %10 = arith.addf %1, %9 : vector<1x128xf32>
    %11 = vector.extract_strided_slice %8 {offsets = [1, 0], sizes = [1, 128], strides = [1, 1]} : vector<2x128xf32> to vector<1x128xf32>
    %12 = arith.addf %2, %11 : vector<1x128xf32>
    %13 = vector.broadcast %10 : vector<1x128xf32> to vector<20x128xf32>
    %14 = arith.subf %4, %13 : vector<20x128xf32>
    %15 = math.absf %14 : vector<20x128xf32>
    %cst = arith.constant 1.000000e+00 : f32
    %16 = vector.broadcast %cst : f32 to vector<20x128xf32>
    %17 = arith.subf %16, %15 : vector<20x128xf32>
    %cst_4 = arith.constant 0.000000e+00 : f32
    %18 = vector.broadcast %cst_4 : f32 to vector<20x128xf32>
    %19 = arith.maximumf %18, %17 : vector<20x128xf32>
    %20 = vector.broadcast %12 : vector<1x128xf32> to vector<16x128xf32>
    %21 = arith.subf %6, %20 : vector<16x128xf32>
    %22 = math.absf %21 : vector<16x128xf32>
    %cst_5 = arith.constant 1.000000e+00 : f32
    %23 = vector.broadcast %cst_5 : f32 to vector<16x128xf32>
    %24 = arith.subf %23, %22 : vector<16x128xf32>
    %cst_6 = arith.constant 0.000000e+00 : f32
    %25 = vector.broadcast %cst_6 : f32 to vector<16x128xf32>
    %26 = arith.maximumf %25, %24 : vector<16x128xf32>
    %c0_7 = arith.constant 0 : index
    %c0_8 = arith.constant 0 : index
    %c0_9 = arith.constant 0 : index
    %27 = vector.load %arg3[%c0_7, %c0_8, %c0_9] : memref<1x48x20xbf16, #tpu.memory_space<vmem>>, vector<1x48x20xbf16>
    %28 = vector.shape_cast %27 : vector<1x48x20xbf16> to vector<48x20xbf16>
    %29 = arith.truncf %19 : vector<20x128xf32> to vector<20x128xbf16>
    %cst_10 = arith.constant dense<0.000000e+00> : vector<48x128xf32>
    %30 = tpu.matmul %28, %29, %cst_10 {dimension_numbers = #tpu.dot_dimension_numbers<[1], [0], [0], [1], [0, 0, 1, 1], [], []>} : vector<48x20xbf16>, vector<20x128xbf16>, vector<48x128xf32> -> vector<48x128xf32>
    %31 = vector.shape_cast %30 : vector<48x128xf32> to vector<3x16x128xf32>
    %32 = vector.shape_cast %26 : vector<16x128xf32> to vector<1x16x128xf32>
    %33 = vector.broadcast %32 : vector<1x16x128xf32> to vector<3x16x128xf32>
    %34 = arith.mulf %31, %33 : vector<3x16x128xf32>
    %cst_11 = arith.constant dense<0.000000e+00> : vector<3x128xf32>
    %35 = vector.multi_reduction <add>, %34, %cst_11 [1] : vector<3x16x128xf32> to vector<3x128xf32>
    %c0_12 = arith.constant 0 : index
    %c0_13 = arith.constant 0 : index
    %c0_14 = arith.constant 0 : index
    %36 = vector.load %arg6[%c0_12, %c0_13, %c0_14] : memref<1x3x128xf32, #tpu.memory_space<vmem>>, vector<1x3x128xf32>
    %37 = vector.shape_cast %36 : vector<1x3x128xf32> to vector<3x128xf32>
    %38 = arith.subf %37, %35 : vector<3x128xf32>
    %39 = math.absf %38 : vector<3x128xf32>
    %40 = vector.shape_cast %39 : vector<3x128xf32> to vector<1x3x128xf32>
    %cst_15 = arith.constant dense<0.000000e+00> : vector<1xf32>
    %41 = vector.multi_reduction <add>, %40, %cst_15 [1, 2] : vector<1x3x128xf32> to vector<1xf32>
    %42 = vector.shape_cast %41 : vector<1xf32> to vector<1x1x1xf32>
    %43 = vector.extract %42[0, 0, 0] : f32 from vector<1x1x1xf32>
    %c0_16 = arith.constant 0 : index
    %c0_17 = arith.constant 0 : index
    %c0_18 = arith.constant 0 : index
    %44 = vector.load %arg5[%c0_16, %c0_17, %c0_18] : memref<1x32x20xf32, #tpu.memory_space<vmem>>, vector<1x32x20xf32>
    %45 = vector.shape_cast %44 : vector<1x32x20xf32> to vector<32x20xf32>
    %cst_19 = arith.constant dense<0.000000e+00> : vector<32x128xf32>
    %46 = tpu.matmul %45, %19, %cst_19 {dimension_numbers = #tpu.dot_dimension_numbers<[1], [0], [0], [1], [0, 0, 1, 1], [], []>} : vector<32x20xf32>, vector<20x128xf32>, vector<32x128xf32> -> vector<32x128xf32>
    %47 = vector.shape_cast %46 : vector<32x128xf32> to vector<2x16x128xf32>
    %48 = vector.shape_cast %26 : vector<16x128xf32> to vector<1x16x128xf32>
    %49 = vector.broadcast %48 : vector<1x16x128xf32> to vector<2x16x128xf32>
    %50 = arith.mulf %47, %49 : vector<2x16x128xf32>
    %cst_20 = arith.constant dense<0.000000e+00> : vector<2x128xf32>
    %51 = vector.multi_reduction <add>, %50, %cst_20 [1] : vector<2x16x128xf32> to vector<2x128xf32>
    %52 = arith.addf %8, %51 : vector<2x128xf32>
    %53 = arith.mulf %8, %8 : vector<2x128xf32>
    %cst_21 = arith.constant dense<0.000000e+00> : vector<128xf32>
    %54 = vector.multi_reduction <add>, %53, %cst_21 [0] : vector<2x128xf32> to vector<128xf32>
    %55 = vector.shape_cast %54 : vector<128xf32> to vector<1x128xf32>
    %cst_22 = arith.constant 9.99999993E-9 : f32
    %56 = vector.broadcast %cst_22 : f32 to vector<1x128xf32>
    %57 = arith.addf %55, %56 : vector<1x128xf32>
    %58 = math.sqrt %57 : vector<1x128xf32>
    %59 = arith.mulf %52, %52 : vector<2x128xf32>
    %cst_23 = arith.constant dense<0.000000e+00> : vector<128xf32>
    %60 = vector.multi_reduction <add>, %59, %cst_23 [0] : vector<2x128xf32> to vector<128xf32>
    %61 = vector.shape_cast %60 : vector<128xf32> to vector<1x128xf32>
    %62 = math.sqrt %61 : vector<1x128xf32>
    %cst_24 = arith.constant 0.00999999977 : f32
    %63 = vector.broadcast %cst_24 : f32 to vector<1x128xf32>
    %64 = arith.mulf %63, %58 : vector<1x128xf32>
    %cst_25 = arith.constant 5.000000e-01 : f32
    %65 = vector.broadcast %cst_25 : f32 to vector<1x128xf32>
    %66 = arith.addf %64, %65 : vector<1x128xf32>
    %67 = arith.cmpf ole, %62, %66 : vector<1x128xf32>
    %68 = arith.extui %67 : vector<1x128xi1> to vector<1x128xi32>
    %69 = arith.sitofp %68 : vector<1x128xi32> to vector<1x128xf32>
    %70 = math.absf %52 : vector<2x128xf32>
    %cst_26 = arith.constant dense<0.000000e+00> : vector<128xf32>
    %71 = vector.multi_reduction <add>, %70, %cst_26 [0] : vector<2x128xf32> to vector<128xf32>
    %72 = vector.shape_cast %71 : vector<128xf32> to vector<1x128xf32>
    %73 = arith.mulf %69, %72 : vector<1x128xf32>
    %74 = vector.shape_cast %73 : vector<1x128xf32> to vector<1x1x128xf32>
    %cst_27 = arith.constant dense<0.000000e+00> : vector<1xf32>
    %75 = vector.multi_reduction <add>, %74, %cst_27 [1, 2] : vector<1x1x128xf32> to vector<1xf32>
    %76 = vector.shape_cast %75 : vector<1xf32> to vector<1x1x1xf32>
    %77 = vector.extract %76[0, 0, 0] : f32 from vector<1x1x1xf32>
    %c0_28 = arith.constant 0 : index
    %c0_29 = arith.constant 0 : index
    %c0_30 = arith.constant 0 : index
    %78 = vector.load %arg9[%c0_28, %c0_29, %c0_30] : memref<1x2x128xf32, #tpu.memory_space<vmem>>, vector<1x2x128xf32>
    %79 = vector.shape_cast %78 : vector<1x2x128xf32> to vector<2x128xf32>
    %80 = vector.extract_strided_slice %79 {offsets = [0, 0], sizes = [1, 128], strides = [1, 1]} : vector<2x128xf32> to vector<1x128xf32>
    %81 = arith.addf %1, %80 : vector<1x128xf32>
    %82 = vector.extract_strided_slice %79 {offsets = [1, 0], sizes = [1, 128], strides = [1, 1]} : vector<2x128xf32> to vector<1x128xf32>
    %83 = arith.addf %2, %82 : vector<1x128xf32>
    %84 = vector.broadcast %81 : vector<1x128xf32> to vector<20x128xf32>
    %85 = arith.subf %4, %84 : vector<20x128xf32>
    %86 = math.absf %85 : vector<20x128xf32>
    %cst_31 = arith.constant 1.000000e+00 : f32
    %87 = vector.broadcast %cst_31 : f32 to vector<20x128xf32>
    %88 = arith.subf %87, %86 : vector<20x128xf32>
    %cst_32 = arith.constant 0.000000e+00 : f32
    %89 = vector.broadcast %cst_32 : f32 to vector<20x128xf32>
    %90 = arith.maximumf %89, %88 : vector<20x128xf32>
    %91 = vector.broadcast %83 : vector<1x128xf32> to vector<16x128xf32>
    %92 = arith.subf %6, %91 : vector<16x128xf32>
    %93 = math.absf %92 : vector<16x128xf32>
    %cst_33 = arith.constant 1.000000e+00 : f32
    %94 = vector.broadcast %cst_33 : f32 to vector<16x128xf32>
    %95 = arith.subf %94, %93 : vector<16x128xf32>
    %cst_34 = arith.constant 0.000000e+00 : f32
    %96 = vector.broadcast %cst_34 : f32 to vector<16x128xf32>
    %97 = arith.maximumf %96, %95 : vector<16x128xf32>
    %c0_35 = arith.constant 0 : index
    %c0_36 = arith.constant 0 : index
    %c0_37 = arith.constant 0 : index
    %98 = vector.load %arg4[%c0_35, %c0_36, %c0_37] : memref<1x48x20xbf16, #tpu.memory_space<vmem>>, vector<1x48x20xbf16>
    %99 = vector.shape_cast %98 : vector<1x48x20xbf16> to vector<48x20xbf16>
    %100 = arith.truncf %90 : vector<20x128xf32> to vector<20x128xbf16>
    %cst_38 = arith.constant dense<0.000000e+00> : vector<48x128xf32>
    %101 = tpu.matmul %99, %100, %cst_38 {dimension_numbers = #tpu.dot_dimension_numbers<[1], [0], [0], [1], [0, 0, 1, 1], [], []>} : vector<48x20xbf16>, vector<20x128xbf16>, vector<48x128xf32> -> vector<48x128xf32>
    %102 = vector.shape_cast %101 : vector<48x128xf32> to vector<3x16x128xf32>
    %103 = vector.shape_cast %97 : vector<16x128xf32> to vector<1x16x128xf32>
    %104 = vector.broadcast %103 : vector<1x16x128xf32> to vector<3x16x128xf32>
    %105 = arith.mulf %102, %104 : vector<3x16x128xf32>
    %cst_39 = arith.constant dense<0.000000e+00> : vector<3x128xf32>
    %106 = vector.multi_reduction <add>, %105, %cst_39 [1] : vector<3x16x128xf32> to vector<3x128xf32>
    %c0_40 = arith.constant 0 : index
    %c0_41 = arith.constant 0 : index
    %c0_42 = arith.constant 0 : index
    %107 = vector.load %arg8[%c0_40, %c0_41, %c0_42] : memref<1x3x128xf32, #tpu.memory_space<vmem>>, vector<1x3x128xf32>
    %108 = vector.shape_cast %107 : vector<1x3x128xf32> to vector<3x128xf32>
    %109 = arith.subf %108, %106 : vector<3x128xf32>
    %110 = math.absf %109 : vector<3x128xf32>
    %111 = vector.shape_cast %110 : vector<3x128xf32> to vector<1x3x128xf32>
    %cst_43 = arith.constant dense<0.000000e+00> : vector<1xf32>
    %112 = vector.multi_reduction <add>, %111, %cst_43 [1, 2] : vector<1x3x128xf32> to vector<1xf32>
    %113 = vector.shape_cast %112 : vector<1xf32> to vector<1x1x1xf32>
    %114 = vector.extract %113[0, 0, 0] : f32 from vector<1x1x1xf32>
    %115 = tpu.iota {dimensions = array<i32: 1>} : vector<8x128xi32>
    %cst_44 = arith.constant 0.000000e+00 : f32
    %116 = vector.broadcast %cst_44 : f32 to vector<8x128xf32>
    %c0_i32 = arith.constant 0 : i32
    %117 = vector.broadcast %c0_i32 : i32 to vector<8x128xi32>
    %118 = arith.cmpi eq, %115, %117 : vector<8x128xi32>
    %cst_45 = arith.constant 0.000000e+00 : f32
    %119 = vector.broadcast %43 : f32 to vector<8x128xf32>
    %120 = vector.broadcast %cst_45 : f32 to vector<8x128xf32>
    %121 = arith.select %118, %119, %120 : vector<8x128xi1>, vector<8x128xf32>
    %122 = arith.addf %116, %121 : vector<8x128xf32>
    %c1_i32 = arith.constant 1 : i32
    %123 = vector.broadcast %c1_i32 : i32 to vector<8x128xi32>
    %124 = arith.cmpi eq, %115, %123 : vector<8x128xi32>
    %cst_46 = arith.constant 0.000000e+00 : f32
    %125 = vector.broadcast %114 : f32 to vector<8x128xf32>
    %126 = vector.broadcast %cst_46 : f32 to vector<8x128xf32>
    %127 = arith.select %124, %125, %126 : vector<8x128xi1>, vector<8x128xf32>
    %128 = arith.addf %122, %127 : vector<8x128xf32>
    %c2_i32 = arith.constant 2 : i32
    %129 = vector.broadcast %c2_i32 : i32 to vector<8x128xi32>
    %130 = arith.cmpi eq, %115, %129 : vector<8x128xi32>
    %cst_47 = arith.constant 0.000000e+00 : f32
    %131 = vector.broadcast %77 : f32 to vector<8x128xf32>
    %132 = vector.broadcast %cst_47 : f32 to vector<8x128xf32>
    %133 = arith.select %130, %131, %132 : vector<8x128xi1>, vector<8x128xf32>
    %134 = arith.addf %128, %133 : vector<8x128xf32>
    %135 = vector.shape_cast %134 : vector<8x128xf32> to vector<1x1x8x128xf32>
    %c0_48 = arith.constant 0 : index
    %c0_49 = arith.constant 0 : index
    %c0_50 = arith.constant 0 : index
    %c0_51 = arith.constant 0 : index
    %136 = vector.load %arg10[%c0_48, %c0_49, %c0_50, %c0_51] : memref<1x1x8x128xf32, #tpu.memory_space<vmem>>, vector<1x1x8x128xf32>
    tpu.vector_store %arg10[%c0_48, %c0_49, %c0_50, %c0_51], %135 {strides = array<i32>} : memref<1x1x8x128xf32, #tpu.memory_space<vmem>>, vector<1x1x8x128xf32>,
    return
  }
  func.func @transform_0(%arg0: i32, %arg1: i32) -> (i32, i32) {
    %c0_i32 = arith.constant 0 : i32
    %c0_i32_0 = arith.constant 0 : i32
    return %c0_i32, %arg1 : i32, i32
  }
  func.func @transform_1(%arg0: i32, %arg1: i32) -> (i32, i32, i32) {
    %c0_i32 = arith.constant 0 : i32
    %c0_i32_0 = arith.constant 0 : i32
    %c0_i32_1 = arith.constant 0 : i32
    return %arg0, %c0_i32, %c0_i32_0 : i32, i32, i32
  }
  func.func @transform_2(%arg0: i32, %arg1: i32) -> (i32, i32, i32) {
    %c0_i32 = arith.constant 0 : i32
    %c0_i32_0 = arith.constant 0 : i32
    %c0_i32_1 = arith.constant 0 : i32
    return %arg0, %c0_i32, %c0_i32_0 : i32, i32, i32
  }
  func.func @transform_3(%arg0: i32, %arg1: i32) -> (i32, i32, i32) {
    %c0_i32 = arith.constant 0 : i32
    %c0_i32_0 = arith.constant 0 : i32
    %c0_i32_1 = arith.constant 0 : i32
    return %arg0, %c0_i32, %c0_i32_0 : i32, i32, i32
  }
  func.func @transform_4(%arg0: i32, %arg1: i32) -> (i32, i32, i32) {
    %c0_i32 = arith.constant 0 : i32
    %c0_i32_0 = arith.constant 0 : i32
    return %arg0, %c0_i32, %arg1 : i32, i32, i32
  }
  func.func @transform_5(%arg0: i32, %arg1: i32) -> (i32, i32, i32) {
    %c0_i32 = arith.constant 0 : i32
    %c0_i32_0 = arith.constant 0 : i32
    return %arg0, %c0_i32, %arg1 : i32, i32, i32
  }
  func.func @transform_6(%arg0: i32, %arg1: i32) -> (i32, i32, i32) {
    %c0_i32 = arith.constant 0 : i32
    %c0_i32_0 = arith.constant 0 : i32
    return %arg0, %c0_i32, %arg1 : i32, i32, i32
  }
  func.func @transform_7(%arg0: i32, %arg1: i32) -> (i32, i32, i32) {
    %c0_i32 = arith.constant 0 : i32
    %c0_i32_0 = arith.constant 0 : i32
    return %arg0, %c0_i32, %arg1 : i32, i32, i32
  }
  func.func @transform_8(%arg0: i32, %arg1: i32) -> (i32, i32, i32, i32) {
    %c0_i32 = arith.constant 0 : i32
    %c0_i32_0 = arith.constant 0 : i32
    %c0_i32_1 = arith.constant 0 : i32
    return %arg0, %arg1, %c0_i32, %c0_i32_0 : i32, i32, i32, i32
  }
}

</mosaic_0001>

<bundles_post_ra>
// kernel: _forward.1
= control target key start
LH: loop header
LB: loop body
LE: loop exit
PB: predicated region body
PF: predicated region fallthrough
CT: control target
= control target key end

     0   :  { %s1488_s27 = smov 0   ;;  %s1490_s28 = smov 0   ;;  %s1686_s0 = inlined_call_operand.vmem [shape: f32[2,384], index: 0, kind: input, shape index: {}]   ;;  %s1687_s1 = inlined_call_operand.vmem [shape: bf16[2,48,20], index: 1, kind: input, shape index: {}]   ;;  %s1688_s2 = inlined_call_operand.vmem [shape: bf16[2,48,20], index: 2, kind: input, shape index: {}]   ;;  %s1689_s3 = inlined_call_operand.vmem [shape: f32[2,32,20], index: 3, kind: input, shape index: {}]   ;;  %s1690_s4 = inlined_call_operand.vmem [shape: f32[2,3,384], index: 4, kind: input, shape index: {}]   ;;  %s1691_s5 = inlined_call_operand.vmem [shape: f32[2,2,384], index: 5, kind: input, shape index: {}]   ;;  %s1692_s6 = inlined_call_operand.vmem [shape: f32[2,3,384], index: 6, kind: input, shape index: {}]   ;;  %s1693_s7 = inlined_call_operand.vmem [shape: f32[2,2,384], index: 7, kind: input, shape index: {}]   ;;  %s1694_s8 = inlined_call_operand.vmem [shape: f32[2,3,8,128], index: 8, kind: output, shape index: {}]  }
   0x1   :  { %s1492_s29 = smov 0   ;;  %s1494_s30 = smov 0  }
   0x2   :  { %s1496_s9 = smov 0  }
   0x3 LB: > { %s27_s10 = sadd.s32 1, %s1431_s29  ;;  %s30_s11 = sadd.s32 1, %s1435_s30  ;;  %s1439_s9 = sphi %s1496_s9, %s18_s9   ;;  %s1435_s30 = sphi %s1494_s30, %s1698_s30   ;;  %s1431_s29 = sphi %s1492_s29, %s1697_s29   ;;  %s1427_s28 = sphi %s1490_s28, %s1696_s28   ;;  %s1423_s27 = sphi %s1488_s27, %s1695_s27  }
   0x4   : > { %p28_p0 = scmp.ge.s32.totalorder %s27_s10, 3  ;;  %p1248_p1 = scmp.ge.s32.totalorder %s1439_s9, 1 }
   0x5   : > { %p365_p2 = scmp.lt.s32.totalorder %s1439_s9, 7 }
   0x6   : > { %s1700_s10 = smov (%p28_p0, %s27_s10), 0  ;;  %s1702_s11 = smov (!%p28_p0, %s30_s11), %s1435_s30 }
   0x7   : > { %p366_p3 = pnand %p1248_p1, %p365_p2  ;;  %p32_p4 = scmp.ge.s32.totalorder %s1702_s11, 2 }
   0x8   : > { %p448_p5 = scmp.lt.s32.totalorder (!%p366_p3), %s1423_s27, 2  ;;  %p452_p6 = scmp.lt.s32.totalorder (!%p366_p3), %s1427_s28, 1 }
   0x9   : > { %s1704_s11 = smov (%p32_p4, %s1702_s11), 0  ;;  %369 = sbr.rel (%p366_p3) target bundleno = 503 (0x1f7), region = 52 }
   0xe   : > { %v509_v0 = vlaneseq  ;;  %v1441_v1 = vmov 0.0   ;;  %s1706_s27 = smov (!%p448_p5, %s1423_s27), 2  ;;  %vm1442_vm0 = vmmov 0   ;;  %s1708_s28 = smov (!%p452_p6, %s1427_s28), 1  ;;  %vm569_vm1 = vcmask 162816  }
   0xf   : > { %1297 = vmatprep.subr.bf16.mxu0 %v1441_v1  ;;  %1301 = vmatprep.mubr.msk.bf16.mxu0 %vm1442_vm0, %v1441_v1  ;;  %s1249_s12 = sshll.u32 %s1706_s27, 1  ;;  %s1342_s16 = smul.u32 3, %s1708_s28  ;;  %vm705_vm2 = vcmask 1043456   ;;  %vm579_vm3 = vcmask 1041408   ;;  %vm671_vm4 = vcmask 1041409   ;;  %vm673_vm5 = vcmask 1042434  }
  0x10   : > { %v1522_v2 = vshrl.u32 %v509_v0, 7  ;;  %s451_s15 = scalar_lea.vmem %s1686_s0, %s1249_s12  ;;  %s1279_s17 = sshll.u32 %s1708_s28, 5  ;;  %vm678_vm7 = vcmask 1042432   ;;  %vm862_vm12 = vcmask 1040384  }
  0x11   : > { %s1341_s18 = smul.u32 24, %s1708_s28  ;;  %s1527_s19 = sadd.s32 %s1342_s16, %s1706_s27  ;;  %v508_v5 = vld [vmem:[%s451_s15] sm:$0x3] }
  0x12   : > { %v512_v3 = vadd.s32 16, %v1522_v2  ;;  %v511_v4 = vadd.s32 8, %v1522_v2  ;;  %s1534_s22 = scalar_lea.vmem %s1689_s3, %s1279_s17  ;;  %s1255_s23 = sshll.u32 %s1527_s19, 1  ;;  %v520_v7 = vsub.s32 0, %v1522_v2  ;;  %v536_v8 = vsub.s32 1, %v1522_v2 }
  0x13   : > { %v689_v6 = vld [vmem:[%s1534_s22] sm:$0xff]  ;;  %s1541_s26 = scalar_lea.vmem %s1687_s1, %s1341_s18  ;;  %s482_s12 = scalar_lea.vmem %s1691_s5, %s1255_s23  ;;  %v1555_v10 = vcvt.s32.f32 %v1522_v2  ;;  %v690_v44 = vld [vmem:[%s1534_s22 + $0x8] sm:$0xff]  ;;  %v691_v49 = vld [vmem:[%s1534_s22 + $0x10] sm:$0xff] }
  0x14   : > { %1319 = vmatprep.mubr.msk.f32.mxu1 %vm569_vm1, %v689_v6  ;;  %s498_s16 = scalar_lea.vmem %s1693_s7, %s1255_s23  ;;  %v1552_v9 = vld [vmem:[%s482_s12] sm:$0x3]  ;;  %s1560_s20 = scalar_lea.vmem %s1688_s2, %s1341_s18  ;;  %v515_v12 = vcvt.s32.f32 %v512_v3  ;;  %v1563_v14 = vcvt.s32.f32 %v511_v4  ;;  %v692_v51 = vld [vmem:[%s1534_s22 + $0x18] sm:$0xff]  ;;  %v1393_v54 = vld [vmem:[%s1541_s26 + $0x8] sm:$0xff]  }
  0x15   : > { %v873_v11 = vld [vmem:[%s498_s16] sm:$0x3]  ;;  %v517_v13 = vadd.f32 %v1552_v9, %v508_v5  ;;  %v1394_v55 = vld [vmem:[%s1560_s20 + $0x8] sm:$0xff]   ;;  %v1395_v56 = vld [vmem:[%s1541_s26 + $0x10] sm:$0xff]   ;;  %v817_v60 = vmul.f32 %v1552_v9, %v1552_v9  ;;  %s1254_s18 = sshll.u32 %s1527_s19, 2  ;;  %s1258_s13 = sshll.u32 %s1527_s19, 3 }
  0x16   : > { %v1565_v15 = vadd.f32 %v873_v11, %v508_v5  ;;  %v1391_v50 = vld [vmem:[%s1541_s26] sm:$0xff]   ;;  %v1396_v57 = vld [vmem:[%s1560_s20 + $0x10] sm:$0xff]   ;;  %s474_s23 = scalar_lea.vmem %s1690_s4, %s1254_s18  ;;  %s490_s26 = scalar_lea.vmem %s1692_s6, %s1254_s18 }
  0x17   : > { %v521_v16 = vrot.slane %v517_v13, %v520_v7  ;;  %v1570_v18 = vrot.slane %v517_v13, %v536_v8  ;;  %v1392_v53 = vld [vmem:[%s1560_s20] sm:$0xff]   ;;  %v818_v63 = vsel %vm579_vm3, %v817_v60, 0.0  ;;  %s506_s15 = scalar_lea.vmem %s1694_s8, %s1258_s13 }
  0x18   : > { %v878_v17 = vrot.slane %v1565_v15, %v520_v7  ;;  %v894_v3 = vrot.slane %v1565_v15, %v536_v8  ;;  %v819_v6 = vrot.slane %v818_v63, 4 }
  0x19   : > { %v524_v19 = vsub.f32 %v515_v12, %v521_v16  ;;  %v523_v20 = vsub.f32 %v1563_v14, %v521_v16  ;;  %v522_v21 = vsub.f32 %v1555_v10, %v521_v16  ;;  %v539_v58 = vsub.f32 %v1563_v14, %v1570_v18 }
  0x1a   : > { %v881_v22 = vsub.f32 %v515_v12, %v878_v17  ;;  %v879_v23 = vsub.f32 %v1555_v10, %v878_v17  ;;  %v880_v24 = vsub.f32 %v1563_v14, %v878_v17  ;;  %v538_v59 = vsub.f32 %v1555_v10, %v1570_v18 }
  0x1b   : > { %v527_v25 = vand.u32 2147483647, %v524_v19  ;;  %v526_v26 = vand.u32 2147483647, %v523_v20  ;;  %v525_v27 = vand.u32 2147483647, %v522_v21  ;;  %v895_v7 = vsub.f32 %v1555_v10, %v894_v3 }
  0x1c   : > { %v884_v28 = vand.u32 2147483647, %v881_v22  ;;  %v882_v29 = vand.u32 2147483647, %v879_v23  ;;  %v883_v33 = vand.u32 2147483647, %v880_v24  ;;  %v896_v11 = vsub.f32 %v1563_v14, %v894_v3 }
  0x1d   : > { %v530_v30 = vsub.f32 1.0, %v527_v25  ;;  %v529_v31 = vsub.f32 1.0, %v526_v26  ;;  %v528_v32 = vsub.f32 1.0, %v525_v27  ;;  %v541_v61 = vand.u32 2147483647, %v539_v58 }
  0x1e   : > { %v887_v34 = vsub.f32 1.0, %v884_v28  ;;  %v885_v39 = vsub.f32 1.0, %v882_v29  ;;  %v886_v40 = vsub.f32 1.0, %v883_v33  ;;  %v540_v62 = vand.u32 2147483647, %v538_v59 }
  0x1f   : > { %v533_v35 = vmax.f32 %v530_v30, 0.0  ;;  %v532_v36 = vmax.f32 %v529_v31, 0.0  ;;  %v531_v37 = vmax.f32 %v528_v32, 0.0  ;;  %v543_v4 = vsub.f32 1.0, %v541_v61 }
  0x20   : > { %v890_v38 = vmax.f32 %v887_v34, 0.0  ;;  %v888_v46 = vmax.f32 %v885_v39, 0.0  ;;  %v889_v47 = vmax.f32 %v886_v40, 0.0  ;;  %v542_v5 = vsub.f32 1.0, %v540_v62 }
  0x21   : > { %1313 = vmatprep.subr.msk.mxu1 %vm705_vm2, %v533_v35  ;;  %v553_v41 = vpack.c.bf16 %v533_v35, %v533_v35  ;;  %v552_v45 = vpack.c.bf16 %v532_v36, %v531_v37  ;;  %v1621_v12 = vmax.f32 %v543_v4, 0.0  ;;  %v820_v17 = vadd.f32 %v819_v6, %v818_v63 }
  0x22   : > { %1314 = vmatpush3.msk.msra.mxu1 %vm705_vm2, %v533_v35  ;;  %v910_v42 = vpack.c.bf16 %v890_v38, %v890_v38  ;;  %v909_v52 = vpack.c.bf16 %v889_v47, %v888_v46  ;;  %v1623_v13 = vmax.f32 %v542_v5, 0.0  ;;  %v897_v19 = vand.u32 2147483647, %v895_v7 }
  0x23   : > { %1315 = vmatprep.subr.mxu1 %v532_v36  ;;  %v581_v43 = vsel %vm579_vm3, %v553_v41, 0  ;;  %v898_v20 = vand.u32 2147483647, %v896_v11  ;;  %v821_v22 = vrot.slane %v820_v17, 2 }
  0x24   : > { %1298 = vmatpush3.bf16.msra.mxu0 %v581_v43  ;;  %1316 = vmatpush3.msra.mxu1 %v532_v36  ;;  %v936_v48 = vsel %vm579_vm3, %v910_v42, 0  ;;  %v899_v14 = vsub.f32 1.0, %v897_v19 }
  0x25   : > { %1317 = vmatprep.subr.mxu1 %v531_v37  ;;  %1299 = vmatprep.subr.bf16.mxu0 %v1441_v1  ;;  %v900_v25 = vsub.f32 1.0, %v898_v20  ;;  %v822_v31 = vadd.f32 %v821_v22, %v820_v17 }
  0x26   : > { %1318 = vmatpush3.msra.mxu1 %v531_v37  ;;  %v901_v36 = vmax.f32 %v899_v14, 0.0 }
  0x27   : > { %1320 = vmatmul.mubr.msk.f32.vlgmr.msra.gmra.mxu1 %vm569_vm1, %v690_v44  ;;  %1325 = vmatprep.subr.bf16.mxu1 %v1441_v1  ;;  %v1631_v39 = vmax.f32 %v900_v25, 0.0  ;;  %v823_v44 = vrot.slane %v822_v31, 1 }
  0x28   : > { %1300 = vmatpush3.bf16.msra.mxu0 %v552_v45  ;;  %1326 = vmatpush3.bf16.msra.mxu1 %v936_v48 }
  0x29   : > { %1322 = vmatprep.mubr.msk.f32.mxu1 %vm569_vm1, %v691_v49  ;;  %1327 = vmatprep.subr.bf16.mxu1 %v1441_v1 }
  0x2b   : > { %1302 = vmatmul.mubr.msk.bf16.vlgmr.msra.gmra.mxu0 %vm569_vm1, %v1391_v50  ;;  %1323 = vmatmul.mubr.msk.f32.gmra.mxu1 %vm569_vm1, %v692_v51 }
  0x2c   : > { %1328 = vmatpush3.bf16.msra.mxu1 %v909_v52  ;;  %1329 = vmatprep.mubr.msk.bf16.mxu1 %vm1442_vm0, %v1441_v1 }
  0x2d   : > { %1305 = vmatprep.mubr.msk.bf16.mxu0 %vm1442_vm0, %v1441_v1 }
  0x2f   : > { %1330 = vmatmul.mubr.msk.bf16.vlgmr.msra.gmra.mxu1 %vm569_vm1, %v1392_v53 }
  0x30   : > { %1333 = vmatprep.mubr.msk.bf16.mxu1 %vm1442_vm0, %v1441_v1 }
  0x33   : > { %1306 = vmatmul.mubr.msk.bf16.gmra.mxu0 %vm569_vm1, %v1393_v54 }
  0x34   : > { %1309 = vmatprep.mubr.msk.bf16.mxu0 %vm1442_vm0, %v1441_v1 }
  0x37   : > { %1334 = vmatmul.mubr.msk.bf16.gmra.mxu1 %vm569_vm1, %v1394_v55 }
  0x38   : > { %1337 = vmatprep.mubr.msk.bf16.mxu1 %vm1442_vm0, %v1441_v1 }
  0x3b   : > { %1310 = vmatmul.mubr.msk.bf16.gmra.mxu0 %vm569_vm1, %v1395_v56  ;;  %v824_v56 = vadd.f32 %v823_v44, %v822_v31 }
  0x3d   : > { %v1636_v11 = vadd.f32 1e-08, %v824_v56 }
  0x3f   : > { %1338 = vmatmul.mubr.msk.bf16.gmra.mxu1 %vm569_vm1, %v1396_v57  ;;  %1397 = vrsqrt.f32 %v1636_v11  ;;  %vm828_vm6 = vcmp.eq.f32.partialorder %v1636_v11, inf  ;;  %vm830_vm8 = vcmp.eq.f32.partialorder %v1636_v11, 0.0 }
  0xe7   : > { %v1321_v16 = vpop.f32.mrf.mxu1 }
  0xe8   : > { %v795_v2 = vmul.f32 %v1321_v16, %v1621_v12 }
  0xe9   : > { %v775_v18 = vpop.f32.mrf.mxu1 }
  0xea   : > { %v794_v8 = vmul.f32 %v775_v18, %v1623_v13 }
  0xeb   : > { %v617_v15 = vpop.f32.mrf.mxu0  ;;  %v1324_v21 = vpop.f32.mrf.mxu1 }
  0xec   : > { %v798_v23 = vadd.f32 %v795_v2, %v794_v8  ;;  %v797_v27 = vmul.f32 %v1324_v21, %v1621_v12  ;;  %v640_v34 = vmul.f32 %v617_v15, %v1623_v13 }
  0xed   : > { %v1303_v10 = vpop.f32.mrf.mxu0  ;;  %v785_v24 = vpop.f32.mrf.mxu1 }
  0xee   : > { %v799_v26 = vrot.slane %v798_v23, 4  ;;  %v796_v28 = vmul.f32 %v785_v24, %v1623_v13 }
  0xef   : > { %v620_v29 = vpop.f32.mrf.mxu0  ;;  %v972_v30 = vpop.f32.mrf.mxu1 }
  0xf0   : > { %v800_v32 = vadd.f32 %v799_v26, %v798_v23  ;;  %v805_v33 = vadd.f32 %v797_v27, %v796_v28  ;;  %v641_v35 = vmul.f32 %v620_v29, %v1621_v12  ;;  %v995_v48 = vmul.f32 %v972_v30, %v901_v36 }
  0xf1   : > { %v1304_v37 = vpop.f32.mrf.mxu0  ;;  %v1331_v38 = vpop.f32.mrf.mxu1 }
  0xf2   : > { %v801_v40 = vrot.slane %v800_v32, 2  ;;  %v806_v41 = vrot.slane %v805_v33, 4  ;;  %v646_v47 = vadd.f32 %v641_v35, %v640_v34 }
  0xf3   : > { %v625_v42 = vpop.f32.mrf.mxu0  ;;  %v975_v43 = vpop.f32.mrf.mxu1 }
  0xf4   : > { %v802_v45 = vadd.f32 %v801_v40, %v800_v32  ;;  %v807_v46 = vadd.f32 %v806_v41, %v805_v33  ;;  %v996_v49 = vmul.f32 %v975_v43, %v1631_v39  ;;  %v642_v53 = vmul.f32 %v625_v42, %v1623_v13 }
  0xf5   : > { %v1307_v50 = vpop.f32.mrf.mxu0  ;;  %v1332_v51 = vpop.f32.mrf.mxu1  ;;  %v647_v60 = vrot.slane %v646_v47, 4 }
  0xf6   : > { %v808_v52 = vrot.slane %v807_v46, 2  ;;  %v803_v57 = vrot.slane %v802_v45, 1  ;;  %v1001_v61 = vadd.f32 %v996_v49, %v995_v48 }
  0xf7   : > { %v628_v54 = vpop.f32.mrf.mxu0  ;;  %v980_v55 = vpop.f32.mrf.mxu1  ;;  %v648_v19 = vadd.f32 %v647_v60, %v646_v47 }
  0xf8   : > { %v809_v58 = vadd.f32 %v808_v52, %v807_v46  ;;  %v643_v59 = vmul.f32 %v628_v54, %v1621_v12  ;;  %v997_v5 = vmul.f32 %v980_v55, %v901_v36  ;;  %v804_v16 = vadd.f32 %v803_v57, %v802_v45 }
  0xf9   : > { %v1308_v62 = vpop.f32.mrf.mxu0  ;;  %v1335_v63 = vpop.f32.mrf.mxu1  ;;  %v1002_v20 = vrot.slane %v1001_v61, 4  ;;  %v649_v28 = vrot.slane %v648_v19, 2 }
  0xfa   : > { %v810_v3 = vrot.slane %v809_v58, 1  ;;  %v653_v4 = vadd.f32 %v643_v59, %v642_v53 }
  0xfb   : > { %v633_v6 = vpop.f32.mrf.mxu0  ;;  %v983_v7 = vpop.f32.mrf.mxu1  ;;  %v1003_v29 = vadd.f32 %v1002_v20, %v1001_v61  ;;  %v650_v42 = vadd.f32 %v649_v28, %v648_v19 }
  0xfc   : > { %v811_v17 = vadd.f32 %v810_v3, %v809_v58  ;;  %v654_v18 = vrot.slane %v653_v4, 4  ;;  %v998_v2 = vmul.f32 %v983_v7, %v1631_v39  ;;  %v644_v22 = vmul.f32 %v633_v6, %v1623_v13  ;;  %v1398_v3 = vpop.eup %1397 }
  0xfd   : > { %v1311_v8 = vpop.f32.mrf.mxu0  ;;  %v1336_v15 = vpop.f32.mrf.mxu1  ;;  %v1004_v43 = vrot.slane %v1003_v29, 2  ;;  %v651_v54 = vrot.slane %v650_v42, 1 }
  0xfe   : > { %v655_v21 = vadd.f32 %v654_v18, %v653_v4  ;;  %v814_v23 = vsel %vm671_vm4, %v811_v17, %v804_v16  ;;  %v1008_v10 = vadd.f32 %v998_v2, %v997_v5  ;;  %v667_v16 = vld [vmem:[%s474_s23] sm:$0x7]  ;;  %v827_v15 = vmul.f32 %v1398_v3, %v1636_v11 }
  0xff   : > { %v636_v24 = vpop.f32.mrf.mxu0  ;;  %v988_v14 = vpop.f32.mrf.mxu1  ;;  %v816_v25 = vadd.f32 %v814_v23, %v1552_v9  ;;  %v1005_v55 = vadd.f32 %v1004_v43, %v1003_v29  ;;  %v652_v4 = vadd.f32 %v651_v54, %v650_v42  ;;  %v1042_v3 = vand.u32 127, %v509_v0 }
 0x100   : > { %v656_v26 = vrot.slane %v655_v21, 2  ;;  %v645_v27 = vmul.f32 %v636_v24, %v1621_v12  ;;  %v1009_v30 = vrot.slane %v1008_v10, 4  ;;  %v999_v13 = vmul.f32 %v988_v14, %v901_v36 }
 0x101   : > { %v1339_v31 = vpop.f32.mrf.mxu1  ;;  %v1312_v32 = vpop.f32.mrf.mxu0  ;;  %v833_v33 = vmul.f32 %v816_v25, %v816_v25  ;;  %v853_v36 = vand.u32 2147483647, %v816_v25  ;;  %v1006_v5 = vrot.slane %v1005_v55, 1  ;;  %v829_v28 = vsel %vm828_vm6, %v1636_v11, %v827_v15 }
 0x102   : > { %v660_v34 = vadd.f32 %v645_v27, %v644_v22  ;;  %v657_v35 = vadd.f32 %v656_v26, %v655_v21  ;;  %v1010_v37 = vadd.f32 %v1009_v30, %v1008_v10  ;;  %v1022_v10 = vld [vmem:[%s490_s26] sm:$0x7]  ;;  %v831_v26 = vand.u32 2147483648, %v1636_v11 }
 0x103   : > { %v991_v38 = vpop.f32.mrf.mxu1  ;;  %v834_v40 = vsel %vm579_vm3, %v833_v33, 0.0  ;;  %v854_v60 = vsel %vm579_vm3, %v853_v36, 0.0  ;;  %v1007_v21 = vadd.f32 %v1006_v5, %v1005_v55  ;;  %vm1043_vm13 = vcmp.eq.s32.totalorder %v1042_v3, 0 }
 0x104   : > { %v661_v9 = vrot.slane %v660_v34, 4  ;;  %v1000_v41 = vmul.f32 %v991_v38, %v1631_v39  ;;  %v835_v12 = vrot.slane %v834_v40, 4  ;;  %v1011_v44 = vrot.slane %v1010_v37, 2 }
 0x105   : > { %v1340_v45 = vpop.f32.mrf.mxu1  ;;  %v658_v49 = vrot.slane %v657_v35, 1  ;;  %v855_v18 = vrot.slane %v854_v60, 4  ;;  %v832_v33 = vsel %vm830_vm8, %v831_v26, %v829_v28  ;;  %vm1047_vm14 = vcmp.eq.s32.totalorder %v1042_v3, 1 }
 0x106   : > { %v662_v46 = vadd.f32 %v661_v9, %v660_v34  ;;  %v1015_v47 = vadd.f32 %v1000_v41, %v999_v13  ;;  %v836_v48 = vadd.f32 %v835_v12, %v834_v40  ;;  %v1012_v50 = vadd.f32 %v1011_v44, %v1010_v37 }
 0x107   : > { %v659_v58 = vadd.f32 %v658_v49, %v657_v35  ;;  %v856_v24 = vadd.f32 %v855_v18, %v854_v60  ;;  %v848_v13 = vmul.f32 0.01, %v832_v33  ;;  %vm1051_vm15 = vcmp.eq.s32.totalorder %v1042_v3, 2 }
 0x108   : > { %v663_v51 = vrot.slane %v662_v46, 2  ;;  %v1016_v52 = vrot.slane %v1015_v47, 4  ;;  %v837_v53 = vrot.slane %v836_v48, 2  ;;  %v1013_v59 = vrot.slane %v1012_v50, 1 }
 0x109   : > { %v672_v20 = vsel %vm671_vm4, %v659_v58, %v652_v4  ;;  %v857_v31 = vrot.slane %v856_v24, 2  ;;  %v849_v40 = vadd.f32 0.5, %v848_v13 }
 0x10a   : > { %v664_v56 = vadd.f32 %v663_v51, %v662_v46  ;;  %v1017_v57 = vadd.f32 %v1016_v52, %v1015_v47  ;;  %v838_v39 = vadd.f32 %v837_v53, %v836_v48  ;;  %v1014_v19 = vadd.f32 %v1013_v59, %v1012_v50 }
 0x10b   : > { %v858_v35 = vadd.f32 %v857_v31, %v856_v24 }
 0x10c   : > { %v665_v61 = vrot.slane %v664_v56, 1  ;;  %v1018_v62 = vrot.slane %v1017_v57, 2  ;;  %v839_v63 = vrot.slane %v838_v39, 1  ;;  %v1026_v25 = vsel %vm671_vm4, %v1014_v19, %v1007_v21 }
 0x10d   : > { %v859_v9 = vrot.slane %v858_v35, 1 }
 0x10e   : > { %v1019_v6 = vadd.f32 %v1018_v62, %v1017_v57  ;;  %v666_v7 = vadd.f32 %v665_v61, %v664_v56  ;;  %v840_v17 = vadd.f32 %v839_v63, %v838_v39 }
 0x10f   : > { %v860_v42 = vadd.f32 %v859_v9, %v858_v35 }
 0x110   : > { %v1020_v2 = vrot.slane %v1019_v6, 1  ;;  %v674_v8 = vsel %vm673_vm5, %v666_v7, %v672_v20  ;;  %1399 = vrsqrt.f32 %v840_v17  ;;  %vm843_vm9 = vcmp.eq.f32.partialorder %v840_v17, inf }
 0x111   : > { %v676_v22 = vsub.f32 %v667_v16, %v674_v8  ;;  %v846_v41 = vand.u32 2147483648, %v840_v17  ;;  %vm845_vm10 = vcmp.eq.f32.partialorder %v840_v17, 0.0 }
 0x112   : > { %v1021_v23 = vadd.f32 %v1020_v2, %v1019_v6 }
 0x113   : > { %v677_v14 = vand.u32 2147483647, %v676_v22 }
 0x114   : > { %v1027_v27 = vsel %vm673_vm5, %v1021_v23, %v1026_v25 }
 0x115   : > { %v679_v29 = vsel %vm678_vm7, %v677_v14, 0.0  ;;  %v1029_v30 = vsub.f32 %v1022_v10, %v1027_v27 }
 0x116   : > { %680 = vadd.xlane.f32.xlu0 %v679_v29 }
 0x117   : > { %v1030_v32 = vand.u32 2147483647, %v1029_v30 }
 0x119   : > { %v1031_v34 = vsel %vm678_vm7, %v1030_v32, 0.0 }
 0x11a   : > { %1032 = vadd.xlane.f32.xlu1 %v1031_v34 }
 0x11d   : > { %v1400_v37 = vpop.eup %1399 }
 0x11e   : > { %v842_v38 = vmul.f32 %v1400_v37, %v840_v17 }
 0x120   : > { %v844_v12 = vsel %vm843_vm9, %v840_v17, %v842_v38 }
 0x121   : > { %v847_v11 = vsel %vm845_vm10, %v846_v41, %v844_v12 }
 0x122   : > { %vm850_vm11 = vcmp.le.f32.partialorder %v847_v11, %v849_v40 }
 0x123   : > { %v1270_v43 = vsel %vm850_vm11, 1.0, %v1441_v1 }
 0x124   : > { %v861_v44 = vmul.f32 %v1270_v43, %v860_v42 }
 0x126   : > { %v863_v45 = vsel %vm862_vm12, %v861_v44, 0.0 }
 0x127   : > { %864 = vadd.xlane.f32.xlu0 %v863_v45 }
 0x19f   : > { %v681_v46 = vpop.xlane.xlu0 %680 }
 0x1a0   : > { %v682_v47 = vrot.slane %v681_v46, 4 }
 0x1a2   : > { %v683_v48 = vadd.f32 %v682_v47, %v681_v46 }
 0x1a3   : > { %v1033_v50 = vpop.xlane.xlu1 %1032 }
 0x1a4   : > { %v684_v49 = vrot.slane %v683_v48, 2  ;;  %v1034_v51 = vrot.slane %v1033_v50, 4 }
 0x1a6   : > { %v685_v36 = vadd.f32 %v684_v49, %v683_v48  ;;  %v1035_v54 = vadd.f32 %v1034_v51, %v1033_v50 }
 0x1a8   : > { %v686_v52 = vrot.slane %v685_v36, 1  ;;  %v1036_v55 = vrot.slane %v1035_v54, 2 }
 0x1aa   : > { %v687_v53 = vadd.f32 %v686_v52, %v685_v36  ;;  %v1037_v1 = vadd.f32 %v1036_v55, %v1035_v54 }
 0x1ac   : > { %1343 = vpush %v687_v53  ;;  %v1038_v60 = vrot.slane %v1037_v1, 1 }
 0x1ae   : > { %v1039_v63 = vadd.f32 %v1038_v60, %v1037_v1 }
 0x1b0   : > { %v865_v56 = vpop.xlane.xlu0 %864 }
 0x1b1   : > { %v866_v57 = vrot.slane %v865_v56, 4 }
 0x1b3   : > { %v867_v39 = vadd.f32 %v866_v57, %v865_v56 }
 0x1b5   : > { %v868_v58 = vrot.slane %v867_v39, 2 }
 0x1b7   : > { %v869_v59 = vadd.f32 %v868_v58, %v867_v39 }
 0x1b9   : > { %v870_v61 = vrot.slane %v869_v59, 1 }
 0x1bb   : > { %v871_v62 = vadd.f32 %v870_v61, %v869_v59 }
 0x1bd   : > { %1345 = vpush %v871_v62 }
 0x1be   : > { %1347 = vpush %v1039_v63 }
 0x1dd   : > { %s1344_s27 = spop %1343 }
 0x1de   : > { %v1044_v4 = vstv %s1344_s27 }
 0x1df   : > { %v1045_v7 = vsel %vm1043_vm13, %v1044_v4, 0.0 }
 0x1ee   : > { %s1346_s28 = spop %1345 }
 0x1ef   : > { %s1348_s12 = spop %1347  ;;  %v1052_v5 = vstv %s1346_s28 }
 0x1f0   : > { %v1048_v6 = vstv %s1348_s12  ;;  %v1053_v18 = vsel %vm1051_vm15, %v1052_v5, 0.0 }
 0x1f1   : > { %v1049_v16 = vsel %vm1047_vm14, %v1048_v6, 0.0 }
 0x1f2   : > { %v1050_v17 = vadd.f32 %v1049_v16, %v1045_v7 }
 0x1f4   : > { %v1054_v19 = vadd.f32 %v1053_v18, %v1050_v17 }
 0x1f6   : > { %1055 = vst [vmem:[%s506_s15] sm:$0xff] %v1054_v19 }
 0x1f7 PF: > { %s18_s9 = sadd.s32 1, %s1439_s9   ;;  %s1695_s27 = smov %s1431_s29 }
 0x1f8   : > { %p15_p7 = scmp.ge.s32.totalorder %s18_s9, 8   ;;  %s1696_s28 = smov %s1435_s30 }
 0x1f9   : > { %s1697_s29 = smov %s1700_s10  ;;  %s1698_s30 = smov %s1704_s11 }
 0x1fa   :  { %17 = sbr.rel (!%p15_p7) target bundleno = 3 (0x3), region = 103 }

</bundles_post_ra>
